<compile_context>
chip_gen: v7x
topology: tpu7x:2x2x1
jax: 0.10.0
libtpu: 0.0.40
codegen_flags: <defaults>
</compile_context>

<pallas_src>
import functools

import jax
import jax.numpy as jnp
from jax.experimental import pallas as pl
from jax.experimental.pallas import tpu as pltpu

LANES = 128
SUBLANES = 8
SMALL_BATCH_CUTOFF = 256   # below this, fused XLA beats any kernel launch
MAX_TILE_ROWS = 1024


def _round_up(n, m):
    return ((n + m - 1) // m) * m


def _cdiv(a, b):
    return (a + b - 1) // b


def _make_mlp_kernel(k1, k2, k3, out_dim, r_w1, r_b1, r_w2, r_b2, r_w3, r_b3):
    """MLP kernel; contractions unrolled as VPU broadcast-FMAs.

    p_ref is the packed parameter slab (P_ROWS, 128):
      rows [r_w1, r_w1+k1) = w1, row r_b1 = b1, etc.  Padded lanes are zero,
      so the padded output lanes are exact (and never stored anyway).
    """

    def kernel(x_ref, p_ref, o_ref):
        x = x_ref[...]                                  # (TB, k1) f32
        p = p_ref[...]                                  # (P_ROWS, 128) f32

        # fc1 + ReLU  (K = k1)
        h1 = p[r_b1:r_b1 + 1, :]                        # (1, 128) broadcasts up
        for k in range(k1):
            h1 = h1 + x[:, k:k + 1] * p[r_w1 + k:r_w1 + k + 1, :]
        h1 = jnp.maximum(h1, 0.0)                       # (TB, 128)

        # fc2 + ReLU  (K = k2)
        h2 = p[r_b2:r_b2 + 1, :]
        for k in range(k2):
            h2 = h2 + h1[:, k:k + 1] * p[r_w2 + k:r_w2 + k + 1, :]
        h2 = jnp.maximum(h2, 0.0)

        # fc3 + sigmoid  (K = k3)
        h3 = p[r_b3:r_b3 + 1, :]
        for k in range(k3):
            h3 = h3 + h2[:, k:k + 1] * p[r_w3 + k:r_w3 + k + 1, :]
        y = jax.nn.sigmoid(h3)                          # EUP

        o_ref[...] = y[:, :out_dim].astype(o_ref.dtype)  # narrow (TB, out_dim) store

    return kernel


def _pack_params(w1, b1, w2, b2, w3, b3):
    """Pack all weights/biases into one lane-padded (P_ROWS, 128) f32 slab."""
    k1, k2, k3 = w1.shape[0], w2.shape[0], w3.shape[0]
    rows = [w1, b1, w2, b2, w3, b3]
    total = k1 + 1 + k2 + 1 + k3 + 1
    p_rows = _round_up(total, SUBLANES)

    def pad_lanes(a):
        return jnp.pad(a, ((0, 0), (0, LANES - a.shape[1])))

    slab = jnp.concatenate([pad_lanes(a.astype(jnp.float32)) for a in rows], axis=0)
    slab = jnp.pad(slab, ((0, p_rows - total), (0, 0)))

    r_w1 = 0
    r_b1 = k1
    r_w2 = k1 + 1
    r_b2 = k1 + 1 + k2
    r_w3 = k1 + 2 + k2
    r_b3 = k1 + 2 + k2 + k3
    return slab, (r_w1, r_b1, r_w2, r_b2, r_w3, r_b3)


def _choose_tiling(batch):
    """Tile rows so large batches get >=4 grid steps and over-pad < one tile."""
    b8 = _round_up(max(batch, 1), SUBLANES)
    min_steps = 4 if b8 > 4 * SUBLANES else 1
    steps = max(min_steps, _cdiv(b8, MAX_TILE_ROWS))
    tb = _round_up(_cdiv(b8, steps), SUBLANES)
    steps = _cdiv(b8, tb)
    return tb, steps * tb, steps


def _jax_forward(x, w1, b1, w2, b2, w3, b3):
    h1 = jnp.maximum(x @ w1 + b1, 0.0)
    h2 = jnp.maximum(h1 @ w2 + b2, 0.0)
    return jax.nn.sigmoid(h2 @ w3 + b3)


@functools.partial(jax.jit, static_argnames=("force_pallas",))
def net_forward(x, w1, b1, w2, b2, w3, b3, *, force_pallas=False):
    """x: (B, 2); weights stored as [in, out], biases as [1, out]."""
    B, in_dim = x.shape
    out_dim = w3.shape[1]
    k1, k2, k3 = w1.shape[0], w2.shape[0], w3.shape[0]

    # Small-batch fast path: one fused XLA op beats pad + pallas_call + slice.
    if B < SMALL_BATCH_CUTOFF and not force_pallas:
        return _jax_forward(x, w1, b1, w2, b2, w3, b3)

    slab, row_offsets = _pack_params(w1, b1, w2, b2, w3, b3)
    p_rows = slab.shape[0]

    TB, B_pad, steps = _choose_tiling(B)
    x_pad = jnp.pad(x, ((0, B_pad - B), (0, 0)))        # rows only; stays (B_pad, 2)

    kernel = _make_mlp_kernel(k1, k2, k3, out_dim, *row_offsets)

    out = pl.pallas_call(
        kernel,
        out_shape=jax.ShapeDtypeStruct((B_pad, out_dim), jnp.float32),
        grid=(steps,),
        in_specs=[
            # Narrow input block: last dim == full array dim (2) is legal.
            pl.BlockSpec((TB, in_dim), lambda i: (i, 0)),
            # Single packed parameter slab, VMEM-resident across the grid.
            pl.BlockSpec((p_rows, LANES), lambda i: (0, 0)),
        ],
        # Narrow output block: last dim == full array dim (4).
        out_specs=pl.BlockSpec((TB, out_dim), lambda i: (i, 0)),
        compiler_params=pltpu.CompilerParams(
            dimension_semantics=("parallel",)),  # dual-TC sharding on v7x
    )(x_pad, slab)

    return out[:B, :]


def init_params(key):
    # Deterministic init mimicking nn.Linear's uniform(-1/sqrt(fan_in), 1/sqrt(fan_in)).
    def linear(key, fan_in, fan_out):
        kw, kb = jax.random.split(key)
        bound = 1.0 / jnp.sqrt(fan_in)
        # stored as [in, out] (transposed vs. PyTorch's [out, in])
        w = jax.random.uniform(kw, (fan_in, fan_out), jnp.float32, -bound, bound)
        b = jax.random.uniform(kb, (1, fan_out), jnp.float32, -bound, bound)
        return w, b

    k1, k2, k3 = jax.random.split(key, 3)
    w1, b1 = linear(k1, 2, 6)
    w2, b2 = linear(k2, 6, 5)
    w3, b3 = linear(k3, 5, 4)
    return w1, b1, w2, b2, w3, b3


if __name__ == "__main__":
    key = jax.random.PRNGKey(0)
    kx, kp = jax.random.split(key)

    # Same as torch.randn(5, 2) in the reference module.
    x = jax.random.normal(kx, (5, 2), dtype=jnp.float32)
    params = init_params(kp)

    # Force the Pallas path so the kernel is actually exercised at B=5.
    out = jax.block_until_ready(net_forward(x, *params, force_pallas=True))
    ref = _jax_forward(x, *params)
    assert out.shape == (5, 4)
    assert jnp.allclose(out, ref, atol=1e-5, rtol=1e-5)

    # Multi-step grid path (B large enough for >=4 tiles, uneven size).
    xb = jax.random.normal(jax.random.PRNGKey(1), (1037, 2), dtype=jnp.float32)
    outb = jax.block_until_ready(net_forward(xb, *params, force_pallas=True))
    refb = _jax_forward(xb, *params)
    assert outb.shape == (1037, 4)
    assert jnp.allclose(outb, refb, atol=1e-5, rtol=1e-5)

    # Default dispatch (small batch -> fused XLA fast path) also correct.
    out_fast = jax.block_until_ready(net_forward(x, *params))
    assert jnp.allclose(out_fast, ref, atol=1e-5, rtol=1e-5)

    print("KERNEL_OK")
</pallas_src>

<mosaic_0001>
module attributes {stable_mosaic.version = 11 : i64} {
  func.func @kernel(%arg0: i32, %arg1: memref<8x2xf32, #tpu.memory_space<vmem>>, %arg2: memref<16x128xf32, #tpu.memory_space<vmem>>, %arg3: memref<8x4xf32, #tpu.memory_space<vmem>>) attributes {dimension_semantics = [#tpu.dimension_semantics<parallel>], iteration_bounds = array<i64: 1>, scalar_prefetch = 0 : i64, scratch_operands = 0 : i64, tpu.core_type = #tpu.core_type<tc>, window_params = [{transform_indices = @transform_0, window_bounds = array<i64: 8, 2>}, {pipeline_mode = #tpu.pipeline_mode<synchronous>, transform_indices = @transform_1, window_bounds = array<i64: 16, 128>}, {transform_indices = @transform_2, window_bounds = array<i64: 8, 4>}]} {
    %c0 = arith.constant 0 : index
    %c0_0 = arith.constant 0 : index
    %0 = vector.load %arg1[%c0, %c0_0] : memref<8x2xf32, #tpu.memory_space<vmem>>, vector<8x2xf32>
    %c0_1 = arith.constant 0 : index
    %c0_2 = arith.constant 0 : index
    %1 = vector.load %arg2[%c0_1, %c0_2] : memref<16x128xf32, #tpu.memory_space<vmem>>, vector<16x128xf32>
    %2 = vector.extract_strided_slice %1 {offsets = [2, 0], sizes = [1, 128], strides = [1, 1]} : vector<16x128xf32> to vector<1x128xf32>
    %3 = vector.extract_strided_slice %0 {offsets = [0, 0], sizes = [8, 1], strides = [1, 1]} : vector<8x2xf32> to vector<8x1xf32>
    %4 = vector.extract_strided_slice %1 {offsets = [0, 0], sizes = [1, 128], strides = [1, 1]} : vector<16x128xf32> to vector<1x128xf32>
    %5 = vector.broadcast %3 : vector<8x1xf32> to vector<8x128xf32>
    %6 = vector.broadcast %4 : vector<1x128xf32> to vector<8x128xf32>
    %7 = arith.mulf %5, %6 : vector<8x128xf32>
    %8 = vector.broadcast %2 : vector<1x128xf32> to vector<8x128xf32>
    %9 = arith.addf %8, %7 : vector<8x128xf32>
    %10 = vector.extract_strided_slice %0 {offsets = [0, 1], sizes = [8, 1], strides = [1, 1]} : vector<8x2xf32> to vector<8x1xf32>
    %11 = vector.extract_strided_slice %1 {offsets = [1, 0], sizes = [1, 128], strides = [1, 1]} : vector<16x128xf32> to vector<1x128xf32>
    %12 = vector.broadcast %10 : vector<8x1xf32> to vector<8x128xf32>
    %13 = vector.broadcast %11 : vector<1x128xf32> to vector<8x128xf32>
    %14 = arith.mulf %12, %13 : vector<8x128xf32>
    %15 = arith.addf %9, %14 : vector<8x128xf32>
    %cst = arith.constant 0.000000e+00 : f32
    %16 = vector.broadcast %cst : f32 to vector<8x128xf32>
    %17 = arith.maximumf %15, %16 : vector<8x128xf32>
    %18 = vector.extract_strided_slice %1 {offsets = [9, 0], sizes = [1, 128], strides = [1, 1]} : vector<16x128xf32> to vector<1x128xf32>
    %19 = vector.extract_strided_slice %17 {offsets = [0, 0], sizes = [8, 1], strides = [1, 1]} : vector<8x128xf32> to vector<8x1xf32>
    %20 = vector.extract_strided_slice %1 {offsets = [3, 0], sizes = [1, 128], strides = [1, 1]} : vector<16x128xf32> to vector<1x128xf32>
    %21 = vector.broadcast %19 : vector<8x1xf32> to vector<8x128xf32>
    %22 = vector.broadcast %20 : vector<1x128xf32> to vector<8x128xf32>
    %23 = arith.mulf %21, %22 : vector<8x128xf32>
    %24 = vector.broadcast %18 : vector<1x128xf32> to vector<8x128xf32>
    %25 = arith.addf %24, %23 : vector<8x128xf32>
    %26 = vector.extract_strided_slice %17 {offsets = [0, 1], sizes = [8, 1], strides = [1, 1]} : vector<8x128xf32> to vector<8x1xf32>
    %27 = vector.extract_strided_slice %1 {offsets = [4, 0], sizes = [1, 128], strides = [1, 1]} : vector<16x128xf32> to vector<1x128xf32>
    %28 = vector.broadcast %26 : vector<8x1xf32> to vector<8x128xf32>
    %29 = vector.broadcast %27 : vector<1x128xf32> to vector<8x128xf32>
    %30 = arith.mulf %28, %29 : vector<8x128xf32>
    %31 = arith.addf %25, %30 : vector<8x128xf32>
    %32 = vector.extract_strided_slice %17 {offsets = [0, 2], sizes = [8, 1], strides = [1, 1]} : vector<8x128xf32> to vector<8x1xf32>
    %33 = vector.extract_strided_slice %1 {offsets = [5, 0], sizes = [1, 128], strides = [1, 1]} : vector<16x128xf32> to vector<1x128xf32>
    %34 = vector.broadcast %32 : vector<8x1xf32> to vector<8x128xf32>
    %35 = vector.broadcast %33 : vector<1x128xf32> to vector<8x128xf32>
    %36 = arith.mulf %34, %35 : vector<8x128xf32>
    %37 = arith.addf %31, %36 : vector<8x128xf32>
    %38 = vector.extract_strided_slice %17 {offsets = [0, 3], sizes = [8, 1], strides = [1, 1]} : vector<8x128xf32> to vector<8x1xf32>
    %39 = vector.extract_strided_slice %1 {offsets = [6, 0], sizes = [1, 128], strides = [1, 1]} : vector<16x128xf32> to vector<1x128xf32>
    %40 = vector.broadcast %38 : vector<8x1xf32> to vector<8x128xf32>
    %41 = vector.broadcast %39 : vector<1x128xf32> to vector<8x128xf32>
    %42 = arith.mulf %40, %41 : vector<8x128xf32>
    %43 = arith.addf %37, %42 : vector<8x128xf32>
    %44 = vector.extract_strided_slice %17 {offsets = [0, 4], sizes = [8, 1], strides = [1, 1]} : vector<8x128xf32> to vector<8x1xf32>
    %45 = vector.extract_strided_slice %1 {offsets = [7, 0], sizes = [1, 128], strides = [1, 1]} : vector<16x128xf32> to vector<1x128xf32>
    %46 = vector.broadcast %44 : vector<8x1xf32> to vector<8x128xf32>
    %47 = vector.broadcast %45 : vector<1x128xf32> to vector<8x128xf32>
    %48 = arith.mulf %46, %47 : vector<8x128xf32>
    %49 = arith.addf %43, %48 : vector<8x128xf32>
    %50 = vector.extract_strided_slice %17 {offsets = [0, 5], sizes = [8, 1], strides = [1, 1]} : vector<8x128xf32> to vector<8x1xf32>
    %51 = vector.extract_strided_slice %1 {offsets = [8, 0], sizes = [1, 128], strides = [1, 1]} : vector<16x128xf32> to vector<1x128xf32>
    %52 = vector.broadcast %50 : vector<8x1xf32> to vector<8x128xf32>
    %53 = vector.broadcast %51 : vector<1x128xf32> to vector<8x128xf32>
    %54 = arith.mulf %52, %53 : vector<8x128xf32>
    %55 = arith.addf %49, %54 : vector<8x128xf32>
    %cst_3 = arith.constant 0.000000e+00 : f32
    %56 = vector.broadcast %cst_3 : f32 to vector<8x128xf32>
    %57 = arith.maximumf %55, %56 : vector<8x128xf32>
    %58 = vector.extract_strided_slice %1 {offsets = [15, 0], sizes = [1, 128], strides = [1, 1]} : vector<16x128xf32> to vector<1x128xf32>
    %59 = vector.extract_strided_slice %57 {offsets = [0, 0], sizes = [8, 1], strides = [1, 1]} : vector<8x128xf32> to vector<8x1xf32>
    %60 = vector.extract_strided_slice %1 {offsets = [10, 0], sizes = [1, 128], strides = [1, 1]} : vector<16x128xf32> to vector<1x128xf32>
    %61 = vector.broadcast %59 : vector<8x1xf32> to vector<8x128xf32>
    %62 = vector.broadcast %60 : vector<1x128xf32> to vector<8x128xf32>
    %63 = arith.mulf %61, %62 : vector<8x128xf32>
    %64 = vector.broadcast %58 : vector<1x128xf32> to vector<8x128xf32>
    %65 = arith.addf %64, %63 : vector<8x128xf32>
    %66 = vector.extract_strided_slice %57 {offsets = [0, 1], sizes = [8, 1], strides = [1, 1]} : vector<8x128xf32> to vector<8x1xf32>
    %67 = vector.extract_strided_slice %1 {offsets = [11, 0], sizes = [1, 128], strides = [1, 1]} : vector<16x128xf32> to vector<1x128xf32>
    %68 = vector.broadcast %66 : vector<8x1xf32> to vector<8x128xf32>
    %69 = vector.broadcast %67 : vector<1x128xf32> to vector<8x128xf32>
    %70 = arith.mulf %68, %69 : vector<8x128xf32>
    %71 = arith.addf %65, %70 : vector<8x128xf32>
    %72 = vector.extract_strided_slice %57 {offsets = [0, 2], sizes = [8, 1], strides = [1, 1]} : vector<8x128xf32> to vector<8x1xf32>
    %73 = vector.extract_strided_slice %1 {offsets = [12, 0], sizes = [1, 128], strides = [1, 1]} : vector<16x128xf32> to vector<1x128xf32>
    %74 = vector.broadcast %72 : vector<8x1xf32> to vector<8x128xf32>
    %75 = vector.broadcast %73 : vector<1x128xf32> to vector<8x128xf32>
    %76 = arith.mulf %74, %75 : vector<8x128xf32>
    %77 = arith.addf %71, %76 : vector<8x128xf32>
    %78 = vector.extract_strided_slice %57 {offsets = [0, 3], sizes = [8, 1], strides = [1, 1]} : vector<8x128xf32> to vector<8x1xf32>
    %79 = vector.extract_strided_slice %1 {offsets = [13, 0], sizes = [1, 128], strides = [1, 1]} : vector<16x128xf32> to vector<1x128xf32>
    %80 = vector.broadcast %78 : vector<8x1xf32> to vector<8x128xf32>
    %81 = vector.broadcast %79 : vector<1x128xf32> to vector<8x128xf32>
    %82 = arith.mulf %80, %81 : vector<8x128xf32>
    %83 = arith.addf %77, %82 : vector<8x128xf32>
    %84 = vector.extract_strided_slice %57 {offsets = [0, 4], sizes = [8, 1], strides = [1, 1]} : vector<8x128xf32> to vector<8x1xf32>
    %85 = vector.extract_strided_slice %1 {offsets = [14, 0], sizes = [1, 128], strides = [1, 1]} : vector<16x128xf32> to vector<1x128xf32>
    %86 = vector.broadcast %84 : vector<8x1xf32> to vector<8x128xf32>
    %87 = vector.broadcast %85 : vector<1x128xf32> to vector<8x128xf32>
    %88 = arith.mulf %86, %87 : vector<8x128xf32>
    %89 = arith.addf %83, %88 : vector<8x128xf32>
    %90 = arith.negf %89 : vector<8x128xf32>
    %91 = math.exp %90 : vector<8x128xf32>
    %cst_4 = arith.constant 1.000000e+00 : f32
    %92 = vector.broadcast %cst_4 : f32 to vector<8x128xf32>
    %93 = arith.addf %92, %91 : vector<8x128xf32>
    %94 = arith.divf %92, %93 : vector<8x128xf32>
    %95 = vector.extract_strided_slice %94 {offsets = [0, 0], sizes = [8, 4], strides = [1, 1]} : vector<8x128xf32> to vector<8x4xf32>
    %c0_5 = arith.constant 0 : index
    %c0_6 = arith.constant 0 : index
    %96 = vector.load %arg3[%c0_5, %c0_6] : memref<8x4xf32, #tpu.memory_space<vmem>>, vector<8x4xf32>
    tpu.vector_store %arg3[%c0_5, %c0_6], %95 {strides = array<i32>} : memref<8x4xf32, #tpu.memory_space<vmem>>, vector<8x4xf32>,
    return
  }
  func.func @transform_0(%arg0: i32) -> (i32, i32) {
    %c0_i32 = arith.constant 0 : i32
    %c0_i32_0 = arith.constant 0 : i32
    return %arg0, %c0_i32 : i32, i32
  }
  func.func @transform_1(%arg0: i32) -> (i32, i32) {
    %c0_i32 = arith.constant 0 : i32
    %c0_i32_0 = arith.constant 0 : i32
    %c0_i32_1 = arith.constant 0 : i32
    return %c0_i32, %c0_i32_0 : i32, i32
  }
  func.func @transform_2(%arg0: i32) -> (i32, i32) {
    %c0_i32 = arith.constant 0 : i32
    %c0_i32_0 = arith.constant 0 : i32
    return %arg0, %c0_i32 : i32, i32
  }
}

</mosaic_0001>

<bundles_post_ra>
// kernel: net_forward.1
= control target key start
LH: loop header
LB: loop body
LE: loop exit
PB: predicated region body
PF: predicated region fallthrough
CT: control target
= control target key end

     0   :  { %v198_v0 = vmov 0   ;;  %v199_v2 = vmov 1   ;;  %v200_v3 = vmov 3   ;;  %v19_v4 = vlaneseq  ;;  %s247_s0 = inlined_call_operand.vmem [shape: f32[8,2], index: 0, kind: input, shape index: {}]   ;;  %s248_s1 = inlined_call_operand.vmem [shape: f32[16,128], index: 1, kind: input, shape index: {}]   ;;  %s249_s2 = inlined_call_operand.vmem [shape: f32[8,4], index: 2, kind: output, shape index: {}]  }
   0x1   :  { %180 = vset.pattern.permute.xlu0 %v198_v0  ;;  %v11_v1 = vld [vmem:[%s247_s0] sm:$0xff]  ;;  %182 = vset.pattern.permute.xlu1 %v198_v0  ;;  %v201_v20 = vmov 2   ;;  %v202_v21 = vmov 4   ;;  %v203_v22 = vmov 5   ;;  %v13_v27 = vld [vmem:[%s248_s1 + $0x8] sm:$0xff]  ;;  %vm167_vm0 = vcmask 31744  }
   0x2   :  { %16 = vperm.xlu0 %180, %v11_v1   ;;  %v223_v5 = vshrl.u32 %v19_v4, 7  ;;  %v12_v7 = vld [vmem:[%s248_s1] sm:$0xff] }
   0x4   :  { %v21_v6 = vsub.s32 0, %v223_v5  ;;  %v26_v9 = vsub.s32 2, %v223_v5  ;;  %v35_v10 = vsub.s32 1, %v223_v5  ;;  %v47_v23 = vsub.s32 3, %v223_v5 }
   0x5   :  { %v61_v24 = vsub.s32 4, %v223_v5  ;;  %v71_v29 = vsub.s32 5, %v223_v5  ;;  %v81_v33 = vsub.s32 6, %v223_v5  ;;  %v91_v37 = vsub.s32 7, %v223_v5 }
   0x6   :  { %181 = vset.pattern.permute.xlu0 %v199_v2  ;;  %v22_v8 = vrot.slane %v12_v7, %v21_v6  ;;  %v27_v12 = vrot.slane %v12_v7, %v26_v9  ;;  %v36_v14 = vrot.slane %v12_v7, %v35_v10  ;;  %v48_v26 = vrot.slane %v12_v7, %v47_v23 }
   0x7   :  { %30 = vperm.xlu0 %181, %v11_v1   ;;  %v62_v28 = vrot.slane %v12_v7, %v61_v24  ;;  %v53_v30 = vrot.slane %v13_v27, %v35_v10  ;;  %v72_v35 = vrot.slane %v12_v7, %v71_v29  ;;  %v82_v39 = vrot.slane %v12_v7, %v81_v33 }
   0x8   :  { %v92_v44 = vrot.slane %v12_v7, %v91_v37  ;;  %v102_v49 = vrot.slane %v13_v27, %v21_v6  ;;  %v114_v55 = vrot.slane %v13_v27, %v26_v9  ;;  %v128_v56 = vrot.slane %v13_v27, %v47_v23 }
   0x9   :  { %v119_v57 = vrot.slane %v13_v27, %v91_v37  ;;  %v138_v61 = vrot.slane %v13_v27, %v61_v24  ;;  %v158_v6 = vrot.slane %v13_v27, %v81_v33 }
   0xb   :  { %185 = vset.pattern.permute.xlu0 %v200_v3 }
  0x81   :  { %v17_v11 = vpop.permute.xlu0 %16 }
  0x82   :  { %v23_v13 = vmul.f32 %v22_v8, %v17_v11 }
  0x84   :  { %v28_v16 = vadd.f32 %v27_v12, %v23_v13 }
  0x86   :  { %v31_v15 = vpop.permute.xlu0 %30 }
  0x87   :  { %v37_v17 = vmul.f32 %v36_v14, %v31_v15 }
  0x89   :  { %v38_v18 = vadd.f32 %v37_v17, %v28_v16 }
  0x8b   :  { %v39_v19 = vmax.f32 %v38_v18, 0.0 }
  0x8d   :  { %76 = vperm.xlu0 %185, %v39_v19   ;;  %42 = vperm.xlu1 %182, %v39_v19  }
  0x91   :  { %183 = vset.pattern.permute.xlu1 %v199_v2  ;;  %188 = vset.pattern.permute.xlu0 %v198_v0  ;;  %v148_v0 = vrot.slane %v13_v27, %v71_v29 }
  0x92   :  { %56 = vperm.xlu1 %183, %v39_v19  }
  0x96   :  { %184 = vset.pattern.permute.xlu1 %v201_v20 }
  0x97   :  { %66 = vperm.xlu1 %184, %v39_v19  }
  0x9b   :  { %186 = vset.pattern.permute.xlu1 %v202_v21 }
  0x9c   :  { %86 = vperm.xlu1 %186, %v39_v19  }
  0xa0   :  { %187 = vset.pattern.permute.xlu1 %v203_v22 }
  0xa1   :  { %96 = vperm.xlu1 %187, %v39_v19  }
  0xa5   :  { %189 = vset.pattern.permute.xlu1 %v199_v2 }
 0x10c   :  { %v43_v25 = vpop.permute.xlu1 %42  ;;  %v77_v42 = vpop.permute.xlu0 %76 }
 0x10d   :  { %v49_v31 = vmul.f32 %v48_v26, %v43_v25  ;;  %v83_v45 = vmul.f32 %v82_v39, %v77_v42 }
 0x10f   :  { %v54_v36 = vadd.f32 %v53_v30, %v49_v31 }
 0x111   :  { %v57_v32 = vpop.permute.xlu1 %56 }
 0x112   :  { %v63_v34 = vmul.f32 %v62_v28, %v57_v32 }
 0x114   :  { %v64_v40 = vadd.f32 %v63_v34, %v54_v36 }
 0x116   :  { %v67_v38 = vpop.permute.xlu1 %66 }
 0x117   :  { %v73_v41 = vmul.f32 %v72_v35, %v67_v38 }
 0x119   :  { %v74_v43 = vadd.f32 %v73_v41, %v64_v40 }
 0x11b   :  { %v87_v46 = vpop.permute.xlu1 %86  ;;  %v84_v47 = vadd.f32 %v83_v45, %v74_v43 }
 0x11c   :  { %v93_v48 = vmul.f32 %v92_v44, %v87_v46 }
 0x11e   :  { %v94_v51 = vadd.f32 %v93_v48, %v84_v47 }
 0x120   :  { %v97_v50 = vpop.permute.xlu1 %96 }
 0x121   :  { %v103_v52 = vmul.f32 %v102_v49, %v97_v50 }
 0x123   :  { %v104_v53 = vadd.f32 %v103_v52, %v94_v51 }
 0x125   :  { %v105_v54 = vmax.f32 %v104_v53, 0.0 }
 0x127   :  { %122 = vperm.xlu1 %189, %v105_v54   ;;  %108 = vperm.xlu0 %188, %v105_v54  }
 0x12b   :  { %190 = vset.pattern.permute.xlu1 %v201_v20  ;;  %191 = vset.pattern.permute.xlu0 %v200_v3 }
 0x12c   :  { %132 = vperm.xlu1 %190, %v105_v54   ;;  %142 = vperm.xlu0 %191, %v105_v54  }
 0x130   :  { %192 = vset.pattern.permute.xlu1 %v202_v21  ;;  %193 = vset.pattern.permute.xlu0 %v202_v21 }
 0x131   :  { %152 = vperm.xlu1 %192, %v105_v54  }
 0x1a6   :  { %v123_v58 = vpop.permute.xlu1 %122  ;;  %v109_v59 = vpop.permute.xlu0 %108 }
 0x1a7   :  { %v115_v60 = vmul.f32 %v114_v55, %v109_v59  ;;  %v129_v62 = vmul.f32 %v128_v56, %v123_v58 }
 0x1a9   :  { %v120_v63 = vadd.f32 %v119_v57, %v115_v60 }
 0x1ab   :  { %v133_v1 = vpop.permute.xlu1 %132  ;;  %v130_v2 = vadd.f32 %v129_v62, %v120_v63  ;;  %v143_v3 = vpop.permute.xlu0 %142 }
 0x1ac   :  { %v139_v4 = vmul.f32 %v138_v61, %v133_v1  ;;  %v149_v8 = vmul.f32 %v148_v0, %v143_v3 }
 0x1ae   :  { %v140_v7 = vadd.f32 %v139_v4, %v130_v2 }
 0x1b0   :  { %v150_v10 = vadd.f32 %v149_v8, %v140_v7  ;;  %v153_v11 = vpop.permute.xlu1 %152 }
 0x1b1   :  { %v159_v5 = vmul.f32 %v158_v6, %v153_v11 }
 0x1b3   :  { %v160_v9 = vadd.f32 %v159_v5, %v150_v10 }
 0x1b5   :  { %v173_v12 = vmul.f32 -1.442695, %v160_v9 }
 0x1b7   :  { %194 = vpow2.f32 %v173_v12 }
 0x1c1   :  { %v195_v13 = vpop.eup %194 }
 0x1c2   :  { %v164_v14 = vadd.f32 1.0, %v195_v13 }
 0x1c4   :  { %196 = vrcp.f32 %v164_v14 }
 0x1ce   :  { %v197_v15 = vpop.eup %196 }
 0x1cf   :  { %168 = vst.msk [vmem:[%s249_s2] sm:$0xff] %vm167_vm0, %v197_v15 }

</bundles_post_ra>
